<compile_context>
chip_gen: v7x
topology: tpu7x:2x2x1
jax: 0.10.0
libtpu: 0.0.40
codegen_flags: <defaults>
</compile_context>

<pallas_src>
import functools

import jax
import jax.numpy as jnp
import numpy as np
from jax import lax
from jax.experimental import pallas as pl
from jax.experimental.pallas import tpu as pltpu

# ----------------------------- model dimensions -----------------------------
VOCAB = 50            # vocab_size
E_DIM = 32            # embedding_dim (small stand-in for 300)
H_DIM = 128           # hidden_dim (small stand-in for 512; 128-lane aligned)
A_DIM = H_DIM // 2    # hidden_dim // 2 = attention/ASPP channels = 64
G_GRP = 16            # GroupNorm groups (norm_groups=16)
ENC_C1 = 160          # EfficientNet-B4 truncated-feature channels
ENC_C2 = 1792         # EfficientNet-B4 classifier in_features
BN_EPS = 1e-5
BN_SCALE = float(1.0 / np.sqrt(1.0 + BN_EPS))  # eval-mode BN with default stats


def _ru(x, m):
    return (x + m - 1) // m * m


def _sigmoid(x):
    # exact sigmoid expressed through tanh -> EUP slot, no VPU divide
    return 0.5 * (jnp.tanh(0.5 * x) + 1.0)


# =============================================================================
# Pallas kernel 1: weight-stationary tiled matmul + (pre-folded) BN + act.
# Used for the conv-stem patch embeddings and the ASPP 1x1 convs.
# =============================================================================
def _mm_bn_kernel(x_ref, w_ref, b_ref, o_ref, *, act):
    y = jnp.dot(x_ref[...], w_ref[...], preferred_element_type=jnp.float32)
    y = y + b_ref[...]
    if act == "relu":
        y = jnp.maximum(y, 0.0)
    elif act == "silu":
        y = y * (0.5 * (jnp.tanh(0.5 * y) + 1.0))
    o_ref[...] = y.astype(o_ref.dtype)


def mm_bn(x, w, b, scale=None, shift=None, act=None, out_dtype=jnp.float32,
          tm=512):
    """act((x @ w') + b') with eval-mode BN pre-folded into w'/b' on the host.

    Weight-stationary: grid over row tiles only, full (128-padded) output
    width per tile, so W / bias keep the same block index across the grid and
    are DMA'd once.  MXU operands are bf16 (f32 accumulation)."""
    n, k = x.shape
    m = w.shape[1]
    w = w.astype(jnp.float32)
    b = b.astype(jnp.float32)
    if scale is not None:
        w = w * scale[None, :]
        b = b * scale + (shift if shift is not None else 0.0)
    elif shift is not None:
        b = b + shift
    tm = min(tm, _ru(n, 8))
    n_p = _ru(n, tm)
    m_p = _ru(m, 128)
    x_p = jnp.pad(x.astype(jnp.bfloat16), ((0, n_p - n), (0, 0)))
    w_p = jnp.pad(w.astype(jnp.bfloat16), ((0, 0), (0, m_p - m)))
    b_p = jnp.pad(b.reshape(1, m), ((0, 0), (0, m_p - m)))
    grid = (n_p // tm,)
    out = pl.pallas_call(
        functools.partial(_mm_bn_kernel, act=act),
        out_shape=jax.ShapeDtypeStruct((n_p, m_p), out_dtype),
        grid_spec=pltpu.PrefetchScalarGridSpec(
            num_scalar_prefetch=0,
            grid=grid,
            in_specs=[pl.BlockSpec((tm, k), lambda i: (i, 0)),
                      pl.BlockSpec((k, m_p), lambda i: (0, 0)),
                      pl.BlockSpec((1, m_p), lambda i: (0, 0))],
            out_specs=pl.BlockSpec((tm, m_p), lambda i: (i, 0))),
        compiler_params=pltpu.CompilerParams(
            dimension_semantics=("parallel",)),
    )(x_p, w_p, b_p)
    return out[:n, :m]


# =============================================================================
# Pallas kernel 2: encoder_to_hidden1 (1x1 conv + BN + SiLU) fused with the
# AdaptiveAvgPool2d mean over spatial positions — (B*P, C2) never hits HBM.
# =============================================================================
def _mm_pool_kernel(x_ref, w_ref, b_ref, o_ref, *, act):
    B, P, K = x_ref.shape
    y = jnp.dot(x_ref[...].reshape(B * P, K), w_ref[...],
                preferred_element_type=jnp.float32) + b_ref[...]
    if act == "relu":
        y = jnp.maximum(y, 0.0)
    elif act == "silu":
        y = y * (0.5 * (jnp.tanh(0.5 * y) + 1.0))
    o_ref[...] = jnp.mean(y.reshape(B, P, -1), axis=1).astype(o_ref.dtype)


def mm_bn_pool(x_bpk, w, b, scale=None, shift=None, act=None,
               out_dtype=jnp.float32):
    """mean_P(act(BN(x @ w + b))) without materializing the (B*P, M) tensor."""
    B, P, K = x_bpk.shape
    m = w.shape[1]
    w = w.astype(jnp.float32)
    b = b.astype(jnp.float32)
    if scale is not None:
        w = w * scale[None, :]
        b = b * scale + (shift if shift is not None else 0.0)
    elif shift is not None:
        b = b + shift
    m_p = _ru(m, 128)
    w_p = jnp.pad(w.astype(jnp.bfloat16), ((0, 0), (0, m_p - m)))
    b_p = jnp.pad(b.reshape(1, m), ((0, 0), (0, m_p - m)))
    out = pl.pallas_call(
        functools.partial(_mm_pool_kernel, act=act),
        out_shape=jax.ShapeDtypeStruct((B, m_p), out_dtype),
        grid_spec=pltpu.PrefetchScalarGridSpec(
            num_scalar_prefetch=0,
            grid=(1,),
            in_specs=[pl.BlockSpec((B, P, K), lambda j: (0, 0, 0)),
                      pl.BlockSpec((K, m_p), lambda j: (0, 0)),
                      pl.BlockSpec((1, m_p), lambda j: (0, 0))],
            out_specs=pl.BlockSpec((B, m_p), lambda j: (0, 0))),
        compiler_params=pltpu.CompilerParams(
            dimension_semantics=("arbitrary",)),
    )(x_bpk.astype(jnp.bfloat16), w_p, b_p)
    return out[:, :m]


# =============================================================================
# Pallas kernel 3: fused decoder — ONE invocation, in-kernel time loop.
#   hoisted  : encoder attention projection + GroupNorm (time-invariant)
#   streamed : precomputed input-side GRU gates (T, B, 3H)
#   per step : one fused h matmul [W_hh | W_dec_att | W_fbeta], VPU attention
#              (softmax + weighted sum, no matmul), f_beta gate (single
#              block-diag group-stat matmul), GRU cell (PyTorch r,z,n order).
#   output   : hidden-state history (T, B, H); logits projection deferred to
#              the wrapper (one big matmul on the packed rows only).
# =============================================================================
def _decoder_kernel(enc_ref, gi_ref, h0_ref, len_ref,
                    w_ea_ref, b_ea_ref, g_att_ref, be_att_ref, v_att_ref,
                    m_grp_ref, w_hcat_ref, b_hcat_ref,
                    g_fb_ref, be_fb_ref, w_ih_c_ref,
                    out_ref, h_scr):
    T, B, H = out_ref.shape
    _, P, A = enc_ref.shape
    H3 = 3 * H
    eps = 1e-5

    enc = enc_ref[...]                                   # (B, P, A) f32
    enc_bf = enc.astype(jnp.bfloat16)
    m_grp = m_grp_ref[...]                               # (A, A) group-average
    lens = len_ref[...]                                  # (B, 1) int32
    v_att = v_att_ref[...][None]                         # (1, 1, A)

    # ---- attention encoder projection + GroupNorm: time-invariant, hoisted ----
    proj = jnp.dot(enc_bf.reshape(B * P, A), w_ea_ref[...],
                   preferred_element_type=jnp.float32)
    proj = proj.reshape(B, P, A) + b_ea_ref[...][None]
    s12 = jnp.concatenate([jnp.sum(proj, axis=1),
                           jnp.sum(proj * proj, axis=1)], axis=0)      # (2B, A)
    gstats = jnp.dot(s12, m_grp, preferred_element_type=jnp.float32) * (1.0 / P)
    gmean = gstats[:B]
    # TODO(synk): one-pass E[x^2]-E[x]^2 variance (clamped >=0); two-pass would
    # be safer at larger activation magnitudes.
    ginv = lax.rsqrt(jnp.maximum(gstats[B:] - gmean * gmean, 0.0) + eps)
    proj_n = (proj - gmean[:, None, :]) * ginv[:, None, :]
    proj_n = proj_n * g_att_ref[...][None] + be_att_ref[...][None]

    h_scr[...] = h0_ref[...]

    def step(t, carry):
        h = h_scr[...]                                   # (B, H) f32

        # one fused hidden-state matmul: [W_hh | W_dec_att | W_fbeta]
        h_all = jnp.dot(h.astype(jnp.bfloat16), w_hcat_ref[...],
                        preferred_element_type=jnp.float32) + b_hcat_ref[...]
        gh = h_all[:, 0:H3]                              # GRU hidden gates
        proj_d = h_all[:, H3:H3 + A]                     # decoder attention proj
        g = h_all[:, H3 + A:H3 + 2 * A]                  # f_beta pre-norm

        # ----- attention: VPU scores / softmax / weighted sum (no MXU) --------
        act = jnp.maximum(proj_n + proj_d[:, None, :], 0.0)            # (B,P,A)
        sc = jnp.sum(act * v_att, axis=-1, keepdims=True)              # (B,P,1)
        sc = sc - jnp.max(sc, axis=1, keepdims=True)
        ex = jnp.exp(sc)
        alpha = ex * pl.reciprocal(jnp.sum(ex, axis=1, keepdims=True),
                                   approx=True)                        # (B,P,1)
        attended = jnp.sum(alpha * enc, axis=1)                        # (B, A)

        # ----- f_beta gate: Linear(no bias) + GroupNorm + sigmoid -------------
        # single block-diagonal group-average matmul for [mean; E[g^2]]
        # TODO(synk): could be a pure-XLU segment reduce instead of one matmul.
        fstats = jnp.dot(jnp.concatenate([g, g * g], axis=0), m_grp,
                         preferred_element_type=jnp.float32)            # (2B, A)
        fm = fstats[:B]
        finv = lax.rsqrt(jnp.maximum(fstats[B:] - fm * fm, 0.0) + eps)
        gate = _sigmoid((g - fm) * finv * g_fb_ref[...] + be_fb_ref[...])
        weighted = attended * gate                                      # (B, A)

        # ----- GRU cell (PyTorch gate order r, z, n); emb-side gates hoisted --
        gi = gi_ref[pl.ds(t, 1), :, :][0] + jnp.dot(
            weighted.astype(jnp.bfloat16), w_ih_c_ref[...],
            preferred_element_type=jnp.float32)                         # (B, 3H)
        r = _sigmoid(gi[:, 0:H] + gh[:, 0:H])
        z = _sigmoid(gi[:, H:2 * H] + gh[:, H:2 * H])
        n = jnp.tanh(gi[:, 2 * H:H3] + r * gh[:, 2 * H:H3])
        h_new = (1.0 - z) * n + z * h

        out_ref[pl.ds(t, 1), :, :] = h_new[None]
        active = lens > t                                               # (B, 1)
        h_scr[...] = jnp.where(active, h_new, h)
        return carry

    # unroll=2 gives the scheduler cross-step visibility on the serial chain
    lax.fori_loop(0, T, step, 0, unroll=2 if T % 2 == 0 else 1)


def decoder_forward(enc3, gi_tbh, h0, lens, fp, bt=None):
    T, B, H3 = gi_tbh.shape
    P, A = enc3.shape[1], enc3.shape[2]
    H = h0.shape[1]
    if bt is None:
        bt = B
        # use both v7x TensorCores when the batch splits into sublane-aligned halves
        if B % 16 == 0:
            bt = B // 2
    assert B % bt == 0
    grid = (B // bt,)

    def rep(arr):
        nd = arr.ndim
        return pl.BlockSpec(arr.shape, lambda i, _n=nd: (0,) * _n)

    in_arrays = [enc3, gi_tbh, h0, lens,
                 fp["w_ea"], fp["b_ea"], fp["g_att"], fp["be_att"], fp["v_att"],
                 fp["m_grp"], fp["w_hcat"], fp["b_hcat"],
                 fp["g_fb"], fp["be_fb"], fp["w_ih_c"]]
    in_specs = ([pl.BlockSpec((bt, P, A), lambda i: (i, 0, 0)),
                 pl.BlockSpec((T, bt, H3), lambda i: (0, i, 0)),
                 pl.BlockSpec((bt, H), lambda i: (i, 0)),
                 pl.BlockSpec((bt, 1), lambda i: (i, 0))]
                + [rep(a) for a in in_arrays[4:]])

    # TODO(synk): at realistic T / vocab on v7x (64 MiB VMEM) chunk T with
    # periodic writeback instead of keeping the full (T, bt, H) block resident.
    grid_spec = pltpu.PrefetchScalarGridSpec(
        num_scalar_prefetch=0,
        grid=grid,
        in_specs=in_specs,
        out_specs=pl.BlockSpec((T, bt, H), lambda i: (0, i, 0)),
        scratch_shapes=[pltpu.VMEM((bt, H), jnp.float32)])
    return pl.pallas_call(
        _decoder_kernel,
        grid_spec=grid_spec,
        out_shape=jax.ShapeDtypeStruct((T, B, H), jnp.float32),
        compiler_params=pltpu.CompilerParams(
            dimension_semantics=("parallel",)),
    )(*in_arrays)


# =============================================================================
# Parameter init (deterministic, synthetic — not a checkpoint load)
# =============================================================================
def init_params(key):
    keys = iter(jax.random.split(key, 40))

    def rnd(shape, scale=0.05):
        return (scale * jax.random.normal(next(keys), shape)).astype(jnp.float32)

    p = {}
    # encoder stub: two 4x4/stride-4 patch-embedding stages (== non-overlapping
    # convs expressed as matmuls) with EfficientNet-B4 channel counts.
    p["stem1_w"] = rnd((4 * 4 * 3, 32));        p["stem1_b"] = rnd((32,), 0.01)
    p["stem2_w"] = rnd((4 * 4 * 32, ENC_C1));   p["stem2_b"] = rnd((ENC_C1,), 0.01)
    # encoder_to_hidden1 stub (modules[-3:]): 1x1 conv 160 -> 1792 (+BN+SiLU)
    p["e2h1_w"] = rnd((ENC_C1, ENC_C2));        p["e2h1_b"] = rnd((ENC_C2,), 0.01)
    # encoder_to_hidden2: Linear(1792, hidden_dim) (+ BatchNorm1d folded)
    p["lin_h_w"] = rnd((ENC_C2, H_DIM));        p["lin_h_b"] = rnd((H_DIM,), 0.01)
    # ASPP (1x1 branch + image-pool branch + 1x1 projection, split top/bottom)
    p["aspp_b1_w"] = rnd((ENC_C1, A_DIM));      p["aspp_b1_b"] = rnd((A_DIM,), 0.01)
    p["aspp_p_w"] = rnd((ENC_C1, A_DIM));       p["aspp_p_b"] = rnd((A_DIM,), 0.01)
    p["aspp_proj_w_top"] = rnd((A_DIM, A_DIM))
    p["aspp_proj_w_bot"] = rnd((A_DIM, A_DIM))
    p["aspp_proj_b"] = rnd((A_DIM,), 0.01)
    # embedding table
    p["emb"] = rnd((VOCAB, E_DIM), 0.1)
    # attention block
    p["w_ea"] = rnd((A_DIM, A_DIM));            p["b_ea"] = rnd((1, A_DIM), 0.01)
    p["g_att"] = jnp.ones((1, A_DIM), jnp.float32)
    p["be_att"] = jnp.zeros((1, A_DIM), jnp.float32)
    p["w_da"] = rnd((H_DIM, A_DIM));            p["b_da"] = rnd((1, A_DIM), 0.01)
    p["v_att"] = rnd((1, A_DIM))
    # f_beta gate
    p["w_fb"] = rnd((H_DIM, A_DIM))
    p["g_fb"] = jnp.ones((1, A_DIM), jnp.float32)
    p["be_fb"] = jnp.zeros((1, A_DIM), jnp.float32)
    # GRU (input = embedding_dim + hidden_dim//2, hidden = hidden_dim)
    p["w_ih_e"] = rnd((E_DIM, 3 * H_DIM));      p["w_ih_c"] = rnd((A_DIM, 3 * H_DIM))
    p["b_ih"] = rnd((1, 3 * H_DIM), 0.01)
    p["w_hh"] = rnd((H_DIM, 3 * H_DIM));        p["b_hh"] = rnd((1, 3 * H_DIM), 0.01)
    # output Linear(hidden_dim, vocab_size)
    p["w_out"] = rnd((H_DIM, VOCAB));           p["b_out"] = rnd((1, VOCAB), 0.01)
    return p


def fuse_decoder_params(p):
    """Fuse the decoder weights once, outside the time loop."""
    cs = A_DIM // G_GRP
    grp = jnp.arange(A_DIM) // cs
    # block-diagonal group-average matrix: (x @ m_grp)[:, c] = mean over c's group
    m_grp = (grp[:, None] == grp[None, :]).astype(jnp.float32) / float(cs)
    w_hcat = jnp.concatenate([p["w_hh"], p["w_da"], p["w_fb"]], axis=1)  # (H, 3H+2A)
    b_hcat = jnp.concatenate(
        [p["b_hh"], p["b_da"], jnp.zeros((1, A_DIM), jnp.float32)], axis=1)
    return dict(
        w_ea=p["w_ea"].astype(jnp.bfloat16), b_ea=p["b_ea"],
        g_att=p["g_att"], be_att=p["be_att"], v_att=p["v_att"],
        m_grp=m_grp,
        w_hcat=w_hcat.astype(jnp.bfloat16), b_hcat=b_hcat,
        g_fb=p["g_fb"], be_fb=p["be_fb"],
        w_ih_c=p["w_ih_c"].astype(jnp.bfloat16))


# =============================================================================
# Full forward pass (mirrors EfficientNetB4GRUAttention.forward)
# =============================================================================
def forward(p, x_nchw, captions, lengths):
    assert all(lengths[i] >= lengths[i + 1] for i in range(len(lengths) - 1)), \
        "pack_padded_sequence expects lengths sorted descending"
    B = x_nchw.shape[0]
    x = jnp.transpose(x_nchw, (0, 2, 3, 1)).astype(jnp.float32)     # NCHW -> NHWC

    # TODO(synk): pretrained torchvision EfficientNet-B4 backbone cannot be
    # reproduced in-script; replaced by a deterministic 2-stage patch-embedding
    # stub (4x4/4 convs == patch matmuls) with matching channel counts (160/1792).
    def patchify(img, ps):
        b, h, w, c = img.shape
        img = img.reshape(b, h // ps, ps, w // ps, ps, c)
        img = jnp.transpose(img, (0, 1, 3, 2, 4, 5))
        return img.reshape(b * (h // ps) * (w // ps), ps * ps * c), h // ps, w // ps

    bn32 = jnp.full((32,), BN_SCALE, jnp.float32)
    bn160 = jnp.full((ENC_C1,), BN_SCALE, jnp.float32)
    bn1792 = jnp.full((ENC_C2,), BN_SCALE, jnp.float32)

    patches1, hs1, ws1 = patchify(x, 4)
    y1 = mm_bn(patches1, p["stem1_w"], p["stem1_b"], scale=bn32,
               act="silu", out_dtype=jnp.bfloat16)
    y1 = y1.reshape(B, hs1, ws1, 32)
    patches2, hs2, ws2 = patchify(y1, 4)
    enc_flat = mm_bn(patches2, p["stem2_w"], p["stem2_b"], scale=bn160,
                     act="silu", out_dtype=jnp.bfloat16)           # (B*P, 160)
    P = hs2 * ws2

    # encoder_to_hidden1 (1x1 conv 160->1792 + BN + SiLU) fused with the
    # AdaptiveAvgPool2d mean of encoder_to_hidden2 — (B*P, 1792) never hits HBM.
    pooled = mm_bn_pool(enc_flat.reshape(B, P, ENC_C1), p["e2h1_w"],
                        p["e2h1_b"], scale=bn1792, act="silu")       # (B, 1792)

    # encoder_to_hidden2 Linear + BatchNorm1d: tiny B-row matmul -> plain XLA.
    # TODO(synk): BatchNorm applied in eval mode with default running stats.
    h0 = (jnp.dot(pooled, p["lin_h_w"]) + p["lin_h_b"]) * BN_SCALE   # (B, H)

    # ASPP: 1x1 branch + image-pool branch + 1x1 projection (BN+ReLU each).
    # TODO(synk): canonical ASPP dilated 3x3 branches omitted (class not given).
    bn64 = jnp.full((A_DIM,), BN_SCALE, jnp.float32)
    b1 = mm_bn(enc_flat, p["aspp_b1_w"], p["aspp_b1_b"], scale=bn64,
               act="relu", out_dtype=jnp.bfloat16)                   # (B*P, 64)
    gpool = jnp.mean(enc_flat.astype(jnp.float32).reshape(B, P, ENC_C1), axis=1)
    pb = jnp.maximum((jnp.dot(gpool, p["aspp_p_w"]) + p["aspp_p_b"]) * BN_SCALE,
                     0.0)                                            # (B, 64)
    top = mm_bn(b1, p["aspp_proj_w_top"], p["aspp_proj_b"])          # (B*P, 64)
    bot = jnp.dot(pb, p["aspp_proj_w_bot"])                          # (B, 64)
    enc3 = jnp.maximum((top.reshape(B, P, A_DIM) + bot[:, None, :]) * BN_SCALE,
                       0.0)                                          # (B, P, A)

    # caption embeddings + input-side GRU gates, hoisted out of the recurrence
    T = int(max(lengths))
    emb = jnp.take(p["emb"], captions[:, :T], axis=0)                # (B, T, E)
    gi = jnp.dot(emb.reshape(B * T, E_DIM).astype(jnp.bfloat16),
                 p["w_ih_e"].astype(jnp.bfloat16),
                 preferred_element_type=jnp.float32) + p["b_ih"]     # (B*T, 3H)
    gi_tbh = jnp.transpose(gi.reshape(B, T, 3 * H_DIM), (1, 0, 2))   # (T, B, 3H)
    lens_arr = jnp.asarray(lengths, jnp.int32).reshape(B, 1)

    fd = fuse_decoder_params(p)
    hs_tbh = decoder_forward(enc3, gi_tbh, h0, lens_arr, fd)         # (T, B, H)

    # pack_padded_sequence(outputs, lengths, batch_first=True).data: gather the
    # valid hidden states, then ONE MXU-efficient logits matmul (deferred out
    # of the time loop).  Dropout(p=0.2) is identity in eval mode.
    idx = np.asarray([t * B + b for t in range(T) for b in range(B)
                      if lengths[b] > t], np.int32)
    hs_packed = hs_tbh.reshape(T * B, H_DIM)[idx]                    # (sum_len, H)
    return jnp.dot(hs_packed, p["w_out"]) + p["b_out"]               # (sum_len, V)


# =============================================================================
if __name__ == "__main__":
    key = jax.random.PRNGKey(0)
    pkey, xkey, ckey = jax.random.split(key, 3)
    params = init_params(pkey)

    B = 2
    x = jax.random.normal(xkey, (B, 3, 64, 64), jnp.float32)       # NCHW input
    lengths = [8, 5]                                               # sorted desc
    captions = jax.random.randint(ckey, (B, max(lengths)), 0, VOCAB,
                                  dtype=jnp.int32)

    out = forward(params, x, captions, lengths)
    out = jax.block_until_ready(out)
    assert out.shape == (sum(lengths), VOCAB), out.shape
    assert bool(jnp.all(jnp.isfinite(out)))
    print("KERNEL_OK")
</pallas_src>

<mosaic_0001>
module attributes {stable_mosaic.version = 11 : i64} {
  func.func @_mm_bn_kernel(%arg0: i32, %arg1: memref<512x48xbf16, #tpu.memory_space<vmem>>, %arg2: memref<48x128xbf16, #tpu.memory_space<vmem>>, %arg3: memref<1x128xf32, #tpu.memory_space<vmem>>, %arg4: memref<512x128xbf16, #tpu.memory_space<vmem>>) attributes {dimension_semantics = [#tpu.dimension_semantics<parallel>], iteration_bounds = array<i64: 1>, scalar_prefetch = 0 : i64, scratch_operands = 0 : i64, tpu.core_type = #tpu.core_type<tc>, window_params = [{transform_indices = @transform_0, window_bounds = array<i64: 512, 48>}, {pipeline_mode = #tpu.pipeline_mode<synchronous>, transform_indices = @transform_1, window_bounds = array<i64: 48, 128>}, {pipeline_mode = #tpu.pipeline_mode<synchronous>, transform_indices = @transform_2, window_bounds = array<i64: 1, 128>}, {transform_indices = @transform_3, window_bounds = array<i64: 512, 128>}]} {
    %c0 = arith.constant 0 : index
    %c0_0 = arith.constant 0 : index
    %0 = vector.load %arg1[%c0, %c0_0] : memref<512x48xbf16, #tpu.memory_space<vmem>>, vector<512x48xbf16>
    %c0_1 = arith.constant 0 : index
    %c0_2 = arith.constant 0 : index
    %1 = vector.load %arg2[%c0_1, %c0_2] : memref<48x128xbf16, #tpu.memory_space<vmem>>, vector<48x128xbf16>
    %cst = arith.constant dense<0.000000e+00> : vector<512x128xf32>
    %2 = tpu.matmul %0, %1, %cst {dimension_numbers = #tpu.dot_dimension_numbers<[1], [0], [0], [1], [0, 0, 1, 1], [], []>} : vector<512x48xbf16>, vector<48x128xbf16>, vector<512x128xf32> -> vector<512x128xf32>
    %c0_3 = arith.constant 0 : index
    %c0_4 = arith.constant 0 : index
    %3 = vector.load %arg3[%c0_3, %c0_4] : memref<1x128xf32, #tpu.memory_space<vmem>>, vector<1x128xf32>
    %4 = vector.broadcast %3 : vector<1x128xf32> to vector<512x128xf32>
    %5 = arith.addf %2, %4 : vector<512x128xf32>
    %cst_5 = arith.constant 5.000000e-01 : f32
    %6 = vector.broadcast %cst_5 : f32 to vector<512x128xf32>
    %7 = arith.mulf %6, %5 : vector<512x128xf32>
    %8 = math.tanh %7 : vector<512x128xf32>
    %cst_6 = arith.constant 1.000000e+00 : f32
    %9 = vector.broadcast %cst_6 : f32 to vector<512x128xf32>
    %10 = arith.addf %8, %9 : vector<512x128xf32>
    %cst_7 = arith.constant 5.000000e-01 : f32
    %11 = vector.broadcast %cst_7 : f32 to vector<512x128xf32>
    %12 = arith.mulf %11, %10 : vector<512x128xf32>
    %13 = arith.mulf %5, %12 : vector<512x128xf32>
    %14 = arith.truncf %13 : vector<512x128xf32> to vector<512x128xbf16>
    %c0_8 = arith.constant 0 : index
    %c0_9 = arith.constant 0 : index
    %15 = vector.load %arg4[%c0_8, %c0_9] : memref<512x128xbf16, #tpu.memory_space<vmem>>, vector<512x128xbf16>
    tpu.vector_store %arg4[%c0_8, %c0_9], %14 {strides = array<i32>} : memref<512x128xbf16, #tpu.memory_space<vmem>>, vector<512x128xbf16>,
    return
  }
  func.func @transform_0(%arg0: i32) -> (i32, i32) {
    %c0_i32 = arith.constant 0 : i32
    %c0_i32_0 = arith.constant 0 : i32
    return %arg0, %c0_i32 : i32, i32
  }
  func.func @transform_1(%arg0: i32) -> (i32, i32) {
    %c0_i32 = arith.constant 0 : i32
    %c0_i32_0 = arith.constant 0 : i32
    %c0_i32_1 = arith.constant 0 : i32
    return %c0_i32, %c0_i32_0 : i32, i32
  }
  func.func @transform_2(%arg0: i32) -> (i32, i32) {
    %c0_i32 = arith.constant 0 : i32
    %c0_i32_0 = arith.constant 0 : i32
    %c0_i32_1 = arith.constant 0 : i32
    return %c0_i32, %c0_i32_0 : i32, i32
  }
  func.func @transform_3(%arg0: i32) -> (i32, i32) {
    %c0_i32 = arith.constant 0 : i32
    %c0_i32_0 = arith.constant 0 : i32
    return %arg0, %c0_i32 : i32, i32
  }
}

</mosaic_0001>

<bundles_post_ra>
// kernel: tpu_custom_call.1
= control target key start
LH: loop header
LB: loop body
LE: loop exit
PB: predicated region body
PF: predicated region fallthrough
CT: control target
= control target key end

     0   :  { %vm271_vm0 = vcmask 392192   ;;  %s2636_s0 = inlined_call_operand.vmem [shape: bf16[512,48], index: 0, kind: input, shape index: {}]   ;;  %s2637_s1 = inlined_call_operand.vmem [shape: bf16[48,128], index: 1, kind: input, shape index: {}]   ;;  %s2638_s2 = inlined_call_operand.vmem [shape: f32[1,128], index: 2, kind: input, shape index: {}]   ;;  %s2639_s3 = inlined_call_operand.hbm [shape: bf16[512,128], index: 3, kind: output, shape index: {}]  }
   0x1   :  { %v1814_v0 = vld [vmem:[%s2637_s1] sm:$0xff]   ;;  %v1815_v1 = vld [vmem:[%s2637_s1 + $0x8] sm:$0xff]   ;;  %v1816_v2 = vld [vmem:[%s2637_s1 + $0x10] sm:$0xff]  }
   0x2   :  { %1735 = vmatprep.subr.bf16.mxu0 %v1814_v0  ;;  %1805 = vmatprep.subr.bf16.mxu1 %v1814_v0  ;;  %v1817_v3 = vld [vmem:[%s2636_s0] sm:$0xff]   ;;  %v1819_v5 = vld [vmem:[%s2636_s0 + $0x8] sm:$0xff]   ;;  %v1821_v7 = vld [vmem:[%s2636_s0 + $0x10] sm:$0xff]  }
   0x3   :  { %1736 = vmatpush3.bf16.msra.mxu0 %v1814_v0  ;;  %1808 = vmatpush3.bf16.msra.mxu1 %v1814_v0  ;;  %v1818_v4 = vld [vmem:[%s2636_s0 + $0x80] sm:$0xff]   ;;  %v1820_v6 = vld [vmem:[%s2636_s0 + $0x88] sm:$0xff]   ;;  %v1822_v8 = vld [vmem:[%s2636_s0 + $0x90] sm:$0xff]  }
   0x4   :  { %1737 = vmatprep.subr.bf16.mxu0 %v1815_v1  ;;  %1806 = vmatprep.subr.bf16.mxu1 %v1815_v1  ;;  %v1823_v9 = vld [vmem:[%s2636_s0 + $0x18] sm:$0xff]   ;;  %v1825_v11 = vld [vmem:[%s2636_s0 + $0x20] sm:$0xff]   ;;  %v1827_v13 = vld [vmem:[%s2636_s0 + $0x28] sm:$0xff]  }
   0x5   :  { %1741 = vmatprep.mubr.msk.bf16.mxu0 %vm271_vm0, %v1817_v3  ;;  %1773 = vmatprep.mubr.msk.bf16.mxu1 %vm271_vm0, %v1818_v4  ;;  %v1824_v10 = vld [vmem:[%s2636_s0 + $0x98] sm:$0xff]   ;;  %v1826_v12 = vld [vmem:[%s2636_s0 + $0xa0] sm:$0xff]   ;;  %v1828_v14 = vld [vmem:[%s2636_s0 + $0xa8] sm:$0xff]  }
   0x6   :  { %v1829_v15 = vld [vmem:[%s2636_s0 + $0x30] sm:$0xff]   ;;  %v1831_v17 = vld [vmem:[%s2636_s0 + $0x38] sm:$0xff]   ;;  %v1833_v19 = vld [vmem:[%s2636_s0 + $0x40] sm:$0xff]  }
   0x7   :  { %1738 = vmatpush3.bf16.msra.mxu0 %v1815_v1  ;;  %1809 = vmatpush3.bf16.msra.mxu1 %v1815_v1  ;;  %v1830_v16 = vld [vmem:[%s2636_s0 + $0xb0] sm:$0xff]   ;;  %v1832_v18 = vld [vmem:[%s2636_s0 + $0xb8] sm:$0xff]   ;;  %v1834_v20 = vld [vmem:[%s2636_s0 + $0xc0] sm:$0xff]  }
   0x8   :  { %1739 = vmatprep.subr.bf16.mxu0 %v1816_v2  ;;  %1807 = vmatprep.subr.bf16.mxu1 %v1816_v2 }
   0xb   :  { %1740 = vmatpush3.bf16.msra.mxu0 %v1816_v2  ;;  %1810 = vmatpush3.bf16.msra.mxu1 %v1816_v2 }
   0xe   :  { %1742 = vmatmul.mubr.msk.bf16.vlgmr.msra.gmra.mrb[0].mxu0 %vm271_vm0, %v1819_v5  ;;  %1774 = vmatmul.mubr.msk.bf16.vlgmr.msra.gmra.mrb[0].mxu1 %vm271_vm0, %v1820_v6 }
   0xf   :  { %1745 = vmatprep.mubr.msk.bf16.mxu0 %vm271_vm0, %v1821_v7  ;;  %1777 = vmatprep.mubr.msk.bf16.mxu1 %vm271_vm0, %v1822_v8 }
  0x16   :  { %1746 = vmatmul.mubr.msk.bf16.gmra.mrb[4].mxu0 %vm271_vm0, %v1823_v9  ;;  %1778 = vmatmul.mubr.msk.bf16.gmra.mrb[4].mxu1 %vm271_vm0, %v1824_v10 }
  0x17   :  { %1749 = vmatprep.mubr.msk.bf16.mxu0 %vm271_vm0, %v1825_v11  ;;  %1781 = vmatprep.mubr.msk.bf16.mxu1 %vm271_vm0, %v1826_v12 }
  0x1e   :  { %1750 = vmatmul.mubr.msk.bf16.gmra.mrb[8].mxu0 %vm271_vm0, %v1827_v13  ;;  %1782 = vmatmul.mubr.msk.bf16.gmra.mrb[8].mxu1 %vm271_vm0, %v1828_v14 }
  0x1f   :  { %1753 = vmatprep.mubr.msk.bf16.mxu0 %vm271_vm0, %v1829_v15  ;;  %1785 = vmatprep.mubr.msk.bf16.mxu1 %vm271_vm0, %v1830_v16 }
  0x20   :  { %8 = vsyncpa [#allocation3], 0  ;;  %v1835_v21 = vld [vmem:[%s2636_s0 + $0x48] sm:$0xff]   ;;  %v1837_v23 = vld [vmem:[%s2636_s0 + $0x50] sm:$0xff]  }
  0x21   :  { %v1836_v22 = vld [vmem:[%s2636_s0 + $0xc8] sm:$0xff]   ;;  %v1838_v24 = vld [vmem:[%s2636_s0 + $0xd0] sm:$0xff]   ;;  %v1839_v25 = vld [vmem:[%s2636_s0 + $0x58] sm:$0xff]  }
  0x22   :  { %v1840_v26 = vld [vmem:[%s2636_s0 + $0xd8] sm:$0xff]   ;;  %v1841_v27 = vld [vmem:[%s2636_s0 + $0x60] sm:$0xff]   ;;  %v1843_v29 = vld [vmem:[%s2636_s0 + $0x68] sm:$0xff]  }
  0x23   :  { %v1842_v28 = vld [vmem:[%s2636_s0 + $0xe0] sm:$0xff]   ;;  %v1844_v30 = vld [vmem:[%s2636_s0 + $0xe8] sm:$0xff]   ;;  %v1845_v31 = vld [vmem:[%s2636_s0 + $0x70] sm:$0xff]  }
  0x24   :  { %v1846_v32 = vld [vmem:[%s2636_s0 + $0xf0] sm:$0xff]   ;;  %v1847_v33 = vld [vmem:[%s2636_s0 + $0x78] sm:$0xff]   ;;  %v2165_v35 = vld [vmem:[%s2638_s2] ss:$0 sm:$0xff] }
  0x25   :  { %v1848_v34 = vld [vmem:[%s2636_s0 + $0xf8] sm:$0xff]  }
  0x26   :  { %1754 = vmatmul.mubr.msk.bf16.gmra.mrb[12].mxu0 %vm271_vm0, %v1831_v17  ;;  %1786 = vmatmul.mubr.msk.bf16.gmra.mrb[12].mxu1 %vm271_vm0, %v1832_v18 }
  0x27   :  { %1757 = vmatprep.mubr.msk.bf16.mxu0 %vm271_vm0, %v1833_v19  ;;  %1789 = vmatprep.mubr.msk.bf16.mxu1 %vm271_vm0, %v1834_v20 }
  0x2e   :  { %1758 = vmatmul.mubr.msk.bf16.gmra.mrb[16].mxu0 %vm271_vm0, %v1835_v21  ;;  %1790 = vmatmul.mubr.msk.bf16.gmra.mrb[16].mxu1 %vm271_vm0, %v1836_v22 }
  0x2f   :  { %1761 = vmatprep.mubr.msk.bf16.mxu0 %vm271_vm0, %v1837_v23  ;;  %1793 = vmatprep.mubr.msk.bf16.mxu1 %vm271_vm0, %v1838_v24 }
  0x36   :  { %1762 = vmatmul.mubr.msk.bf16.gmra.mrb[20].mxu0 %vm271_vm0, %v1839_v25  ;;  %1794 = vmatmul.mubr.msk.bf16.gmra.mrb[20].mxu1 %vm271_vm0, %v1840_v26 }
  0x37   :  { %1765 = vmatprep.mubr.msk.bf16.mxu0 %vm271_vm0, %v1841_v27  ;;  %1797 = vmatprep.mubr.msk.bf16.mxu1 %vm271_vm0, %v1842_v28 }
  0x3e   :  { %1766 = vmatmul.mubr.msk.bf16.gmra.mrb[24].mxu0 %vm271_vm0, %v1843_v29  ;;  %1798 = vmatmul.mubr.msk.bf16.gmra.mrb[24].mxu1 %vm271_vm0, %v1844_v30 }
  0x3f   :  { %1769 = vmatprep.mubr.msk.bf16.mxu0 %vm271_vm0, %v1845_v31  ;;  %1801 = vmatprep.mubr.msk.bf16.mxu1 %vm271_vm0, %v1846_v32 }
  0x46   :  { %1770 = vmatmul.mubr.msk.bf16.gmra.mrb[28].mxu0 %vm271_vm0, %v1847_v33  ;;  %1802 = vmatmul.mubr.msk.bf16.gmra.mrb[28].mxu1 %vm271_vm0, %v1848_v34 }
  0xe1   :  { %v1743_v36 = vpop.f32.mrb[0].mxu0  ;;  %v1775_v37 = vpop.f32.mrb[0].mxu1 }
  0xe2   :  { %v2168_v38 = vadd.f32 %v1743_v36, %v2165_v35  ;;  %v2171_v39 = vadd.f32 %v1775_v37, %v2165_v35  ;;  %v402_v40 = vpop.f32.mrb[1].mxu0  ;;  %v530_v41 = vpop.f32.mrb[1].mxu1 }
  0xe3   :  { %v2174_v42 = vadd.f32 %v2165_v35, %v402_v40  ;;  %v2177_v43 = vadd.f32 %v2165_v35, %v530_v41  ;;  %v1744_v44 = vpop.f32.mrb[2].mxu0  ;;  %v1776_v45 = vpop.f32.mrb[2].mxu1 }
  0xe4   :  { %v659_v46 = vmul.f32 0.5, %v2168_v38  ;;  %v691_v47 = vmul.f32 0.5, %v2171_v39  ;;  %v2182_v48 = vadd.f32 %v1744_v44, %v2165_v35  ;;  %v2185_v49 = vadd.f32 %v1776_v45, %v2165_v35  ;;  %v405_v50 = vpop.f32.mrb[3].mxu0  ;;  %v533_v51 = vpop.f32.mrb[3].mxu1 }
  0xe5   :  { %v657_v52 = vmul.f32 0.5, %v2174_v42  ;;  %v689_v53 = vmul.f32 0.5, %v2177_v43  ;;  %v2190_v54 = vadd.f32 %v2165_v35, %v405_v50  ;;  %v2193_v55 = vadd.f32 %v2165_v35, %v533_v51 }
  0xe6   :  { %1849 = vtanh.f32 %v659_v46  ;;  %v660_v56 = vmul.f32 0.5, %v2182_v48  ;;  %v692_v57 = vmul.f32 0.5, %v2185_v49 }
  0xe7   :  { %1851 = vtanh.f32 %v691_v47  ;;  %v658_v58 = vmul.f32 0.5, %v2190_v54  ;;  %v690_v59 = vmul.f32 0.5, %v2193_v55 }
  0xe8   :  { %1853 = vtanh.f32 %v657_v52 }
  0xe9   :  { %1855 = vtanh.f32 %v689_v53  ;;  %v1747_v60 = vpop.f32.mrb[4].mxu0  ;;  %v1779_v61 = vpop.f32.mrb[4].mxu1 }
  0xea   :  { %1857 = vtanh.f32 %v660_v56  ;;  %v2200_v62 = vadd.f32 %v1747_v60, %v2165_v35  ;;  %v2203_v63 = vadd.f32 %v1779_v61, %v2165_v35  ;;  %v418_v0 = vpop.f32.mrb[5].mxu0  ;;  %v546_v1 = vpop.f32.mrb[5].mxu1 }
  0xeb   :  { %1859 = vtanh.f32 %v692_v57  ;;  %v2206_v2 = vadd.f32 %v2165_v35, %v418_v0  ;;  %v2209_v3 = vadd.f32 %v2165_v35, %v546_v1  ;;  %v1748_v4 = vpop.f32.mrb[6].mxu0  ;;  %v1780_v5 = vpop.f32.mrb[6].mxu1 }
  0xec   :  { %1861 = vtanh.f32 %v658_v58  ;;  %v663_v6 = vmul.f32 0.5, %v2200_v62  ;;  %v695_v7 = vmul.f32 0.5, %v2203_v63  ;;  %v2214_v8 = vadd.f32 %v1748_v4, %v2165_v35  ;;  %v421_v9 = vpop.f32.mrb[7].mxu0  ;;  %v549_v10 = vpop.f32.mrb[7].mxu1 }
  0xed   :  { %1863 = vtanh.f32 %v690_v59  ;;  %v661_v11 = vmul.f32 0.5, %v2206_v2  ;;  %v693_v12 = vmul.f32 0.5, %v2209_v3  ;;  %v2219_v13 = vadd.f32 %v1780_v5, %v2165_v35 }
  0xee   :  { %1865 = vtanh.f32 %v663_v6  ;;  %v664_v14 = vmul.f32 0.5, %v2214_v8  ;;  %v2223_v15 = vadd.f32 %v2165_v35, %v421_v9  ;;  %v2226_v16 = vadd.f32 %v2165_v35, %v549_v10 }
  0xef   :  { %1867 = vtanh.f32 %v695_v7  ;;  %v696_v17 = vmul.f32 0.5, %v2219_v13 }
  0xf0   :  { %v1850_v18 = vpop.eup %1849  ;;  %1869 = vtanh.f32 %v661_v11  ;;  %v662_v19 = vmul.f32 0.5, %v2223_v15  ;;  %v694_v22 = vmul.f32 0.5, %v2226_v16 }
  0xf1   :  { %v1852_v20 = vpop.eup %1851  ;;  %v787_v21 = vadd.f32 1.0, %v1850_v18  ;;  %1871 = vtanh.f32 %v693_v12  ;;  %v1751_v23 = vpop.f32.mrb[8].mxu0 }
  0xf2   :  { %v1783_v24 = vpop.f32.mrb[8].mxu1  ;;  %v1854_v25 = vpop.eup %1853  ;;  %v819_v26 = vadd.f32 1.0, %v1852_v20  ;;  %1873 = vtanh.f32 %v664_v14  ;;  %v2232_v27 = vadd.f32 %v1751_v23, %v2165_v35 }
  0xf3   :  { %v2235_v28 = vadd.f32 %v1783_v24, %v2165_v35  ;;  %v434_v29 = vpop.f32.mrb[9].mxu0  ;;  %v2237_v30 = vpop.f32.mrb[9].mxu1  ;;  %v851_v32 = vmul.f32 0.5, %v787_v21  ;;  %v785_v33 = vadd.f32 1.0, %v1854_v25  ;;  %1875 = vtanh.f32 %v696_v17 }
  0xf4   :  { %v1856_v31 = vpop.eup %1855  ;;  %v2240_v34 = vadd.f32 %v2165_v35, %v434_v29  ;;  %v2242_v36 = vpop.f32.mrb[10].mxu0  ;;  %v883_v41 = vmul.f32 0.5, %v819_v26  ;;  %1877 = vtanh.f32 %v662_v19  ;;  %v667_v45 = vmul.f32 0.5, %v2232_v27 }
  0xf5   :  { %v2244_v37 = vpop.f32.mrb[10].mxu1  ;;  %v1858_v40 = vpop.eup %1857  ;;  %v817_v44 = vadd.f32 1.0, %v1856_v31  ;;  %v915_v51 = vmul.f32 %v851_v32, %v2168_v38  ;;  %v849_v52 = vmul.f32 0.5, %v785_v33  ;;  %1879 = vtanh.f32 %v694_v22 }
  0xf6   :  { %v2247_v46 = vpop.f32.mrb[11].mxu0  ;;  %v2249_v47 = vpop.f32.mrb[11].mxu1  ;;  %v788_v53 = vadd.f32 1.0, %v1858_v40  ;;  %v947_v57 = vmul.f32 %v883_v41, %v2171_v39  ;;  %1881 = vtanh.f32 %v667_v45  ;;  %v699_v4 = vmul.f32 0.5, %v2235_v28 }
  0xf7   :  { %v1860_v50 = vpop.eup %1859  ;;  %v881_v58 = vmul.f32 0.5, %v817_v44  ;;  %v913_v61 = vmul.f32 %v849_v52, %v2174_v42  ;;  %v665_v9 = vmul.f32 0.5, %v2240_v34 }
  0xf8   :  { %v1862_v56 = vpop.eup %1861  ;;  %v820_v59 = vadd.f32 1.0, %v1860_v50  ;;  %v852_v0 = vmul.f32 0.5, %v788_v53  ;;  %1883 = vtanh.f32 %v699_v4 }
  0xf9   :  { %v1864_v60 = vpop.eup %1863  ;;  %v786_v1 = vadd.f32 1.0, %v1862_v56  ;;  %v945_v6 = vmul.f32 %v881_v58, %v2177_v43  ;;  %v2258_v14 = vpop.f32.mrb[12].mxu0  ;;  %1885 = vtanh.f32 %v665_v9 }
  0xfa   :  { %v1866_v5 = vpop.eup %1865  ;;  %v884_v38 = vmul.f32 0.5, %v820_v59  ;;  %v818_v7 = vadd.f32 1.0, %v1864_v60  ;;  %v916_v39 = vmul.f32 %v852_v0, %v2182_v48  ;;  %v2260_v42 = vpop.f32.mrb[12].mxu1 }
  0xfb   :  { %v1868_v10 = vpop.eup %1867  ;;  %v850_v11 = vmul.f32 0.5, %v786_v1  ;;  %v791_v12 = vadd.f32 1.0, %v1866_v5  ;;  %v2263_v43 = vpop.f32.mrb[13].mxu0 }
  0xfc   :  { %v1870_v17 = vpop.eup %1869  ;;  %v948_v18 = vmul.f32 %v884_v38, %v2185_v49  ;;  %v882_v19 = vmul.f32 0.5, %v818_v7  ;;  %v823_v20 = vadd.f32 1.0, %v1868_v10  ;;  %v2265_v21 = vpop.f32.mrb[13].mxu1  ;;  %v1517_v23 = vpack.c.bf16 %v916_v39, %v915_v51 }
  0xfd   :  { %v1872_v22 = vpop.eup %1871  ;;  %v914_v48 = vmul.f32 %v850_v11, %v2190_v54  ;;  %v855_v24 = vmul.f32 0.5, %v791_v12  ;;  %v789_v25 = vadd.f32 1.0, %v1870_v17  ;;  %v2268_v26 = vpop.f32.mrb[14].mxu0  ;;  %v2299_v12 = vadd.f32 %v2244_v37, %v2165_v35 }
  0xfe   :  { %v2270_v29 = vpop.f32.mrb[14].mxu1  ;;  %v1874_v31 = vpop.eup %1873  ;;  %v1597_v32 = vpack.c.bf16 %v948_v18, %v947_v57  ;;  %v946_v49 = vmul.f32 %v882_v19, %v2193_v55  ;;  %v887_v33 = vmul.f32 0.5, %v823_v20  ;;  %v821_v40 = vadd.f32 1.0, %v1872_v22  ;;  %1669 = vst [vmem:[#allocation2 + $0x8] sm:$0xff] %v1517_v23  }
  0xff   :  { %v2273_v41 = vpop.f32.mrb[15].mxu0  ;;  %v2275_v44 = vpop.f32.mrb[15].mxu1  ;;  %v1512_v50 = vpack.c.bf16 %v914_v48, %v913_v61  ;;  %v919_v54 = vmul.f32 %v855_v24, %v2200_v62  ;;  %v853_v51 = vmul.f32 0.5, %v789_v25  ;;  %v792_v52 = vadd.f32 1.0, %v1874_v31 }
 0x100   :  { %v1876_v45 = vpop.eup %1875  ;;  %1685 = vst [vmem:[#allocation2 + $0x88] sm:$0xff] %v1597_v32   ;;  %v1592_v56 = vpack.c.bf16 %v946_v49, %v945_v6  ;;  %v951_v57 = vmul.f32 %v887_v33, %v2203_v63  ;;  %v885_v58 = vmul.f32 0.5, %v821_v40  ;;  %v2282_v61 = vadd.f32 %v2165_v35, %v2237_v30 }
 0x101   :  { %v1878_v53 = vpop.eup %1877  ;;  %v824_v55 = vadd.f32 1.0, %v1876_v45  ;;  %1513 = vst [vmem:[#allocation2] sm:$0xff] %v1512_v50   ;;  %v917_v60 = vmul.f32 %v853_v51, %v2206_v2  ;;  %v856_v0 = vmul.f32 0.5, %v792_v52  ;;  %v2287_v63 = vadd.f32 %v2242_v36, %v2165_v35  ;;  %v2291_v10 = vpop.f32.mrb[16].mxu0 }
 0x102   :  { %v1880_v59 = vpop.eup %1879  ;;  %v790_v1 = vadd.f32 1.0, %v1878_v53  ;;  %1684 = vst [vmem:[#allocation2 + $0x80] sm:$0xff] %v1592_v56   ;;  %v949_v4 = vmul.f32 %v885_v58, %v2209_v3  ;;  %v697_v9 = vmul.f32 0.5, %v2282_v61  ;;  %v2293_v30 = vpop.f32.mrb[16].mxu1  ;;  %v700_v33 = vmul.f32 0.5, %v2299_v12 }
 0x103   :  { %v1882_v62 = vpop.eup %1881  ;;  %v888_v5 = vmul.f32 0.5, %v824_v55  ;;  %v822_v6 = vadd.f32 1.0, %v1880_v59  ;;  %v920_v38 = vmul.f32 %v856_v0, %v2214_v8  ;;  %v668_v3 = vmul.f32 0.5, %v2287_v63  ;;  %v2301_v36 = vpop.f32.mrb[17].mxu0 }
 0x104   :  { %v854_v7 = vmul.f32 0.5, %v790_v1  ;;  %v795_v2 = vadd.f32 1.0, %v1882_v62  ;;  %v2303_v8 = vpop.f32.mrb[17].mxu1  ;;  %v1884_v17 = vpop.eup %1883  ;;  %1887 = vtanh.f32 %v697_v9  ;;  %v2325_v50 = vadd.f32 %v2165_v35, %v2249_v47 }
 0x105   :  { %v952_v39 = vmul.f32 %v888_v5, %v2219_v13  ;;  %v886_v11 = vmul.f32 0.5, %v822_v6  ;;  %v1527_v18 = vpack.c.bf16 %v920_v38, %v919_v54  ;;  %v2306_v22 = vpop.f32.mrb[18].mxu0  ;;  %v2308_v13 = vpop.f32.mrb[18].mxu1  ;;  %v827_v37 = vadd.f32 1.0, %v1884_v17 }
 0x106   :  { %v918_v19 = vmul.f32 %v854_v7, %v2223_v15  ;;  %v859_v20 = vmul.f32 0.5, %v795_v2  ;;  %v1886_v23 = vpop.eup %1885  ;;  %1889 = vtanh.f32 %v668_v3  ;;  %v2311_v25 = vpop.f32.mrb[19].mxu0  ;;  %v2333_v51 = vadd.f32 %v2260_v42, %v2165_v35 }
 0x107   :  { %v1607_v48 = vpack.c.bf16 %v952_v39, %v951_v57  ;;  %v950_v24 = vmul.f32 %v886_v11, %v2226_v16  ;;  %v2313_v31 = vpop.f32.mrb[19].mxu1  ;;  %1671 = vst [vmem:[#allocation2 + $0x18] sm:$0xff] %v1527_v18   ;;  %v793_v49 = vadd.f32 1.0, %v1886_v23  ;;  %v891_v45 = vmul.f32 0.5, %v827_v37 }
 0x108   :  { %v1522_v32 = vpack.c.bf16 %v918_v19, %v917_v60  ;;  %v2316_v15 = vmul.f32 %v859_v20, %v2232_v27  ;;  %v2321_v16 = vadd.f32 %v2165_v35, %v2247_v46  ;;  %1891 = vtanh.f32 %v700_v33 }
 0x109   :  { %1687 = vst [vmem:[#allocation2 + $0x98] sm:$0xff] %v1607_v48   ;;  %v1602_v40 = vpack.c.bf16 %v950_v24, %v949_v4  ;;  %v857_v54 = vmul.f32 0.5, %v793_v49  ;;  %v2329_v27 = vadd.f32 %v2258_v14, %v2165_v35  ;;  %v2336_v52 = vmul.f32 %v891_v45, %v2235_v28  ;;  %v1763_v28 = vpop.f32.mrb[20].mxu0  ;;  %v2353_v58 = vpop.f32.mrb[20].mxu1 }
 0x10a   :  { %1670 = vst [vmem:[#allocation2 + $0x10] sm:$0xff] %v1522_v32   ;;  %v666_v46 = vmul.f32 0.5, %v2321_v16  ;;  %v698_v47 = vmul.f32 0.5, %v2325_v50  ;;  %v2342_v53 = vadd.f32 %v2165_v35, %v2263_v43  ;;  %v703_v42 = vmul.f32 0.5, %v2333_v51  ;;  %v2364_v59 = vpop.f32.mrb[21].mxu0  ;;  %v2366_v60 = vpop.f32.mrb[21].mxu1 }
 0x10b   :  { %1686 = vst [vmem:[#allocation2 + $0x90] sm:$0xff] %v1602_v40   ;;  %v2345_v56 = vmul.f32 %v857_v54, %v2240_v34  ;;  %v671_v14 = vmul.f32 0.5, %v2329_v27  ;;  %v2351_v57 = vadd.f32 %v2165_v35, %v2265_v21  ;;  %v2358_v43 = vadd.f32 %v2268_v26, %v2165_v35  ;;  %v2377_v26 = vpop.f32.mrb[22].mxu0  ;;  %v2379_v62 = vpop.f32.mrb[22].mxu1 }
 0x10c   :  { %1893 = vtanh.f32 %v666_v46  ;;  %v669_v55 = vmul.f32 0.5, %v2342_v53  ;;  %v2362_v34 = vadd.f32 %v2270_v29, %v2165_v35  ;;  %v2371_v0 = vadd.f32 %v2165_v35, %v2273_v41  ;;  %v2387_v6 = vpop.f32.mrb[23].mxu0  ;;  %v2389_v41 = vpop.f32.mrb[23].mxu1 }
 0x10d   :  { %1895 = vtanh.f32 %v698_v47  ;;  %v701_v21 = vmul.f32 0.5, %v2351_v57  ;;  %v2375_v1 = vadd.f32 %v2165_v35, %v2275_v44  ;;  %v672_v29 = vmul.f32 0.5, %v2358_v43 }
 0x10e   :  { %1897 = vtanh.f32 %v671_v14  ;;  %v704_v4 = vmul.f32 0.5, %v2362_v34  ;;  %v2385_v5 = vadd.f32 %v2291_v10, %v2165_v35  ;;  %v1888_v38 = vpop.eup %1887  ;;  %v670_v44 = vmul.f32 0.5, %v2371_v0 }
 0x10f   :  { %1899 = vtanh.f32 %v703_v42  ;;  %v702_v7 = vmul.f32 0.5, %v2375_v1  ;;  %v2395_v2 = vadd.f32 %v2293_v30, %v2165_v35  ;;  %v825_v39 = vadd.f32 1.0, %v1888_v38 }
 0x110   :  { %v1890_v9 = vpop.eup %1889  ;;  %1901 = vtanh.f32 %v669_v55  ;;  %v675_v10 = vmul.f32 0.5, %v2385_v5  ;;  %v2400_v11 = vadd.f32 %v2165_v35, %v2301_v36  ;;  %v2405_v18 = vadd.f32 %v2165_v35, %v2303_v8 }
 0x111   :  { %v796_v3 = vadd.f32 1.0, %v1890_v9  ;;  %1903 = vtanh.f32 %v701_v21  ;;  %v707_v17 = vmul.f32 0.5, %v2395_v2  ;;  %v889_v19 = vmul.f32 0.5, %v825_v39  ;;  %v2417_v37 = vpop.f32.mrb[24].mxu0  ;;  %v2419_v8 = vpop.f32.mrb[24].mxu1 }
 0x112   :  { %1905 = vtanh.f32 %v672_v29  ;;  %v673_v30 = vmul.f32 0.5, %v2400_v11  ;;  %v2410_v20 = vadd.f32 %v2306_v22, %v2165_v35  ;;  %v1892_v23 = vpop.eup %1891  ;;  %v705_v36 = vmul.f32 0.5, %v2405_v18  ;;  %v2425_v33 = vpop.f32.mrb[25].mxu0 }
 0x113   :  { %v860_v48 = vmul.f32 0.5, %v796_v3  ;;  %1907 = vtanh.f32 %v704_v4  ;;  %v2415_v24 = vadd.f32 %v2308_v13, %v2165_v35  ;;  %v2422_v32 = vmul.f32 %v889_v19, %v2282_v61  ;;  %v2427_v40 = vpop.f32.mrb[25].mxu1  ;;  %v2435_v46 = vpop.f32.mrb[26].mxu0 }
 0x114   :  { %v828_v49 = vadd.f32 1.0, %v1892_v23  ;;  %1909 = vtanh.f32 %v670_v44  ;;  %v676_v22 = vmul.f32 0.5, %v2410_v20  ;;  %v2433_v54 = vadd.f32 %v2165_v35, %v2311_v25  ;;  %v2437_v61 = vpop.f32.mrb[26].mxu1  ;;  %v2446_v55 = vpop.f32.mrb[27].mxu0 }
 0x115   :  { %v924_v45 = vmul.f32 %v860_v48, %v2287_v63  ;;  %1911 = vtanh.f32 %v702_v7  ;;  %v708_v13 = vmul.f32 0.5, %v2415_v24  ;;  %v2441_v42 = vadd.f32 %v2165_v35, %v2313_v31  ;;  %v2448_v21 = vpop.f32.mrb[27].mxu1 }
 0x116   :  { %v1894_v47 = vpop.eup %1893  ;;  %v892_v14 = vmul.f32 0.5, %v828_v49  ;;  %1913 = vtanh.f32 %v675_v10  ;;  %v2444_v63 = vadd.f32 %v1763_v28, %v2165_v35  ;;  %v674_v38 = vmul.f32 0.5, %v2433_v54 }
 0x117   :  { %v1896_v25 = vpop.eup %1895  ;;  %v1537_v29 = vpack.c.bf16 %v924_v45, %v2316_v15  ;;  %v794_v4 = vadd.f32 1.0, %v1894_v47  ;;  %1915 = vtanh.f32 %v707_v17  ;;  %v706_v31 = vmul.f32 0.5, %v2441_v42 }
 0x118   :  { %v1898_v44 = vpop.eup %1897  ;;  %v956_v7 = vmul.f32 %v892_v14, %v2299_v12  ;;  %v826_v9 = vadd.f32 1.0, %v1896_v25  ;;  %1917 = vtanh.f32 %v673_v30  ;;  %v679_v3 = vmul.f32 0.5, %v2444_v63 }
 0x119   :  { %v1900_v28 = vpop.eup %1899  ;;  %1673 = vst [vmem:[#allocation2 + $0x28] sm:$0xff] %v1537_v29   ;;  %v858_v39 = vmul.f32 0.5, %v794_v4  ;;  %v799_v10 = vadd.f32 1.0, %v1898_v44  ;;  %1919 = vtanh.f32 %v705_v36  ;;  %v2457_v45 = vpop.f32.mrb[28].mxu0 }
 0x11a   :  { %v1902_v19 = vpop.eup %1901  ;;  %v1617_v15 = vpack.c.bf16 %v956_v7, %v2336_v52  ;;  %v890_v17 = vmul.f32 0.5, %v826_v9  ;;  %v831_v23 = vadd.f32 1.0, %v1900_v28  ;;  %1921 = vtanh.f32 %v676_v22  ;;  %v2459_v47 = vpop.f32.mrb[28].mxu1 }
 0x11b   :  { %v1904_v48 = vpop.eup %1903  ;;  %v922_v12 = vmul.f32 %v858_v39, %v2321_v16  ;;  %v863_v49 = vmul.f32 0.5, %v799_v10  ;;  %v797_v30 = vadd.f32 1.0, %v1902_v19  ;;  %1923 = vtanh.f32 %v708_v13  ;;  %v2462_v52 = vpop.f32.mrb[29].mxu0 }
 0x11c   :  { %v1906_v14 = vpop.eup %1905  ;;  %1689 = vst [vmem:[#allocation2 + $0xa8] sm:$0xff] %v1617_v15   ;;  %v954_v36 = vmul.f32 %v890_v17, %v2325_v50  ;;  %v895_v25 = vmul.f32 0.5, %v831_v23  ;;  %v829_v29 = vadd.f32 1.0, %v1904_v48  ;;  %1925 = vtanh.f32 %v674_v38  ;;  %v2464_v22 = vpop.f32.mrb[29].mxu1 }
 0x11d   :  { %v1908_v4 = vpop.eup %1907  ;;  %v1532_v16 = vpack.c.bf16 %v922_v12, %v2345_v56  ;;  %v927_v13 = vmul.f32 %v863_v49, %v2329_v27  ;;  %v861_v44 = vmul.f32 0.5, %v797_v30  ;;  %v800_v7 = vadd.f32 1.0, %v1906_v14  ;;  %v2468_v9 = vpop.f32.mrb[30].mxu0 }
 0x11e   :  { %v2470_v28 = vpop.f32.mrb[30].mxu1  ;;  %v1910_v39 = vpop.eup %1909  ;;  %v1612_v50 = vpack.c.bf16 %v954_v36, %v2422_v32  ;;  %v959_v38 = vmul.f32 %v895_v25, %v2333_v51  ;;  %v893_v10 = vmul.f32 0.5, %v829_v29  ;;  %v832_v19 = vadd.f32 1.0, %v1908_v4 }
 0x11f   :  { %v2474_v15 = vpop.f32.mrb[31].mxu0  ;;  %v2476_v17 = vpop.f32.mrb[31].mxu1  ;;  %1672 = vst [vmem:[#allocation2 + $0x20] sm:$0xff] %v1532_v16   ;;  %v925_v27 = vmul.f32 %v861_v44, %v2342_v53  ;;  %v864_v23 = vmul.f32 0.5, %v800_v7  ;;  %v798_v48 = vadd.f32 1.0, %v1910_v39  ;;  %1927 = vtanh.f32 %v706_v31 }
 0x120   :  { %v1912_v56 = vpop.eup %1911  ;;  %1688 = vst [vmem:[#allocation2 + $0xa0] sm:$0xff] %v1612_v50   ;;  %v957_v49 = vmul.f32 %v893_v10, %v2351_v57  ;;  %v896_v32 = vmul.f32 0.5, %v832_v19  ;;  %1929 = vtanh.f32 %v679_v3  ;;  %v2483_v29 = vadd.f32 %v2353_v58, %v2165_v35 }
 0x121   :  { %v1914_v12 = vpop.eup %1913  ;;  %v830_v30 = vadd.f32 1.0, %v1912_v56  ;;  %v928_v14 = vmul.f32 %v864_v23, %v2358_v43  ;;  %v862_v36 = vmul.f32 0.5, %v798_v48  ;;  %v2488_v57 = vadd.f32 %v2165_v35, %v2364_v59 }
 0x122   :  { %v1916_v51 = vpop.eup %1915  ;;  %v803_v25 = vadd.f32 1.0, %v1914_v12  ;;  %v960_v4 = vmul.f32 %v896_v32, %v2362_v34 }
 0x123   :  { %v1918_v53 = vpop.eup %1917  ;;  %v894_v31 = vmul.f32 0.5, %v830_v30  ;;  %v835_v16 = vadd.f32 1.0, %v1916_v51  ;;  %v1547_v3 = vpack.c.bf16 %v928_v14, %v927_v13  ;;  %v926_v7 = vmul.f32 %v862_v36, %v2371_v0 }
 0x124   :  { %v1920_v44 = vpop.eup %1919  ;;  %v867_v43 = vmul.f32 0.5, %v803_v25  ;;  %v801_v39 = vadd.f32 1.0, %v1918_v53  ;;  %v1627_v10 = vpack.c.bf16 %v960_v4, %v959_v38  ;;  %v2498_v25 = vadd.f32 %v2165_v35, %v2366_v60 }
 0x125   :  { %v1922_v50 = vpop.eup %1921  ;;  %v958_v58 = vmul.f32 %v894_v31, %v2375_v1  ;;  %v899_v19 = vmul.f32 0.5, %v835_v16  ;;  %v833_v56 = vadd.f32 1.0, %v1920_v44  ;;  %1675 = vst [vmem:[#allocation2 + $0x38] sm:$0xff] %v1547_v3   ;;  %v1542_v34 = vpack.c.bf16 %v926_v7, %v925_v27 }
 0x126   :  { %v1924_v23 = vpop.eup %1923  ;;  %v804_v48 = vadd.f32 1.0, %v1922_v50  ;;  %1691 = vst [vmem:[#allocation2 + $0xb8] sm:$0xff] %v1627_v10   ;;  %v931_v32 = vmul.f32 %v867_v43, %v2385_v5  ;;  %v865_v13 = vmul.f32 0.5, %v801_v39  ;;  %v711_v1 = vmul.f32 0.5, %v2483_v29 }
 0x127   :  { %v1926_v12 = vpop.eup %1925  ;;  %v1622_v59 = vpack.c.bf16 %v958_v58, %v957_v49  ;;  %v836_v30 = vadd.f32 1.0, %v1924_v23  ;;  %1674 = vst [vmem:[#allocation2 + $0x30] sm:$0xff] %v1542_v34   ;;  %v963_v0 = vmul.f32 %v899_v19, %v2395_v2  ;;  %v897_v14 = vmul.f32 0.5, %v833_v56 }
 0x128   :  { %v868_v51 = vmul.f32 0.5, %v804_v48  ;;  %v802_v38 = vadd.f32 1.0, %v1926_v12  ;;  %v677_v27 = vmul.f32 0.5, %v2488_v57  ;;  %1931 = vtanh.f32 %v711_v1 }
 0x129   :  { %1690 = vst [vmem:[#allocation2 + $0xb0] sm:$0xff] %v1622_v59   ;;  %v900_v36 = vmul.f32 0.5, %v836_v30  ;;  %v1928_v49 = vpop.eup %1927  ;;  %v2503_v2 = vadd.f32 %v2377_v26, %v2165_v35  ;;  %v709_v44 = vmul.f32 0.5, %v2498_v25  ;;  %v929_v3 = vmul.f32 %v865_v13, %v2400_v11 }
 0x12a   :  { %v932_v5 = vmul.f32 %v868_v51, %v2410_v20  ;;  %v866_v53 = vmul.f32 0.5, %v802_v38  ;;  %v1930_v4 = vpop.eup %1929  ;;  %v834_v16 = vadd.f32 1.0, %v1928_v49  ;;  %1933 = vtanh.f32 %v677_v27 }
 0x12b   :  { %v964_v31 = vmul.f32 %v900_v36, %v2415_v24  ;;  %v680_v20 = vmul.f32 0.5, %v2503_v2  ;;  %1935 = vtanh.f32 %v709_v44  ;;  %v2512_v26 = vadd.f32 %v2379_v62, %v2165_v35 }
 0x12c   :  { %v1557_v60 = vpack.c.bf16 %v932_v5, %v931_v32  ;;  %v930_v7 = vmul.f32 %v866_v53, %v2433_v54  ;;  %v898_v39 = vmul.f32 0.5, %v834_v16  ;;  %v961_v24 = vmul.f32 %v897_v14, %v2405_v18 }
 0x12d   :  { %v1637_v43 = vpack.c.bf16 %v964_v31, %v963_v0  ;;  %1937 = vtanh.f32 %v680_v20  ;;  %v2517_v11 = vadd.f32 %v2165_v35, %v2387_v6  ;;  %v712_v10 = vmul.f32 0.5, %v2512_v26 }
 0x12e   :  { %1677 = vst [vmem:[#allocation2 + $0x48] sm:$0xff] %v1557_v60   ;;  %v1552_v50 = vpack.c.bf16 %v930_v7, %v929_v3  ;;  %v962_v54 = vmul.f32 %v898_v39, %v2441_v42  ;;  %v2523_v58 = vadd.f32 %v2165_v35, %v2389_v41  ;;  %v2527_v62 = vadd.f32 %v2417_v37, %v2165_v35 }
 0x12f   :  { %1693 = vst [vmem:[#allocation2 + $0xc8] sm:$0xff] %v1637_v43   ;;  %v807_v18 = vadd.f32 1.0, %v1930_v4  ;;  %v678_v19 = vmul.f32 0.5, %v2517_v11  ;;  %v2532_v6 = vadd.f32 %v2419_v8, %v2165_v35  ;;  %v2536_v42 = vadd.f32 %v2165_v35, %v2425_v33 }
 0x130   :  { %1676 = vst [vmem:[#allocation2 + $0x40] sm:$0xff] %v1552_v50   ;;  %v1632_v56 = vpack.c.bf16 %v962_v54, %v961_v24  ;;  %1939 = vtanh.f32 %v712_v10  ;;  %v710_v41 = vmul.f32 0.5, %v2523_v58  ;;  %v683_v23 = vmul.f32 0.5, %v2527_v62 }
 0x131   :  { %1941 = vtanh.f32 %v678_v19  ;;  %v715_v37 = vmul.f32 0.5, %v2532_v6  ;;  %v681_v34 = vmul.f32 0.5, %v2536_v42  ;;  %v2544_v48 = vadd.f32 %v2165_v35, %v2427_v40 }
 0x132   :  { %1692 = vst [vmem:[#allocation2 + $0xc0] sm:$0xff] %v1632_v56   ;;  %1943 = vtanh.f32 %v710_v41  ;;  %v2548_v8 = vadd.f32 %v2435_v46, %v2165_v35  ;;  %v2552_v33 = vadd.f32 %v2437_v61, %v2165_v35  ;;  %v2556_v12 = vadd.f32 %v2165_v35, %v2446_v55  ;;  %v1932_v59 = vpop.eup %1931 }
 0x133   :  { %1945 = vtanh.f32 %v683_v23  ;;  %v713_v32 = vmul.f32 0.5, %v2544_v48  ;;  %v2561_v40 = vadd.f32 %v2165_v35, %v2448_v21  ;;  %v2565_v46 = vadd.f32 %v2457_v45, %v2165_v35 }
 0x134   :  { %v1934_v13 = vpop.eup %1933  ;;  %v839_v30 = vadd.f32 1.0, %v1932_v59  ;;  %1947 = vtanh.f32 %v715_v37  ;;  %v684_v61 = vmul.f32 0.5, %v2548_v8  ;;  %v716_v55 = vmul.f32 0.5, %v2552_v33 }
 0x135   :  { %v871_v0 = vmul.f32 0.5, %v807_v18  ;;  %v805_v51 = vadd.f32 1.0, %v1934_v13  ;;  %1949 = vtanh.f32 %v681_v34  ;;  %v682_v38 = vmul.f32 0.5, %v2556_v12  ;;  %v1936_v1 = vpop.eup %1935 }
 0x136   :  { %1951 = vtanh.f32 %v713_v32  ;;  %v714_v21 = vmul.f32 0.5, %v2561_v40  ;;  %v2573_v45 = vadd.f32 %v2459_v47, %v2165_v35  ;;  %v903_v36 = vmul.f32 0.5, %v839_v30 }
 0x137   :  { %v1938_v14 = vpop.eup %1937  ;;  %v837_v27 = vadd.f32 1.0, %v1936_v1  ;;  %1953 = vtanh.f32 %v684_v61  ;;  %v687_v49 = vmul.f32 0.5, %v2565_v46  ;;  %v2578_v53 = vadd.f32 %v2165_v35, %v2462_v52 }
 0x138   :  { %v808_v5 = vadd.f32 1.0, %v1938_v14  ;;  %1955 = vtanh.f32 %v716_v55  ;;  %v935_v4 = vmul.f32 %v871_v0, %v2444_v63  ;;  %v869_v31 = vmul.f32 0.5, %v805_v51 }
 0x139   :  { %1957 = vtanh.f32 %v682_v38  ;;  %v719_v16 = vmul.f32 0.5, %v2573_v45  ;;  %v2584_v3 = vadd.f32 %v2165_v35, %v2464_v22  ;;  %v2588_v60 = vadd.f32 %v2468_v9, %v2165_v35 }
 0x13a   :  { %v1940_v47 = vpop.eup %1939  ;;  %v872_v44 = vmul.f32 0.5, %v808_v5  ;;  %1959 = vtanh.f32 %v714_v21  ;;  %v967_v52 = vmul.f32 %v903_v36, %v2483_v29  ;;  %v901_v20 = vmul.f32 0.5, %v837_v27 }
 0x13b   :  { %v1942_v7 = vpop.eup %1941  ;;  %v840_v63 = vadd.f32 1.0, %v1940_v47  ;;  %1961 = vtanh.f32 %v687_v49  ;;  %v685_v50 = vmul.f32 0.5, %v2578_v53  ;;  %v2595_v22 = vadd.f32 %v2470_v28, %v2165_v35 }
 0x13c   :  { %v1944_v43 = vpop.eup %1943  ;;  %v936_v39 = vmul.f32 %v872_v44, %v2503_v2  ;;  %v806_v24 = vadd.f32 1.0, %v1942_v7  ;;  %1963 = vtanh.f32 %v719_v16  ;;  %v688_v18 = vmul.f32 0.5, %v2588_v60  ;;  %v1977_v44 = vld [vmem:[%s2638_s2] ss:$0 sm:$0xff]  ;;  %s2002_s2 = smov [#allocation2]  }
 0x13d   :  { %v1946_v54 = vpop.eup %1945  ;;  %v904_v10 = vmul.f32 0.5, %v840_v63  ;;  %v838_v9 = vadd.f32 1.0, %v1944_v43  ;;  %v717_v23 = vmul.f32 0.5, %v2584_v3  ;;  %v933_v28 = vmul.f32 %v869_v31, %v2488_v57  ;;  %s1302_s28 = sshll.u32 %s2002_s2, 4  ;;  %s1303_s28 = int_to_ptr.vmem [resolvable:$true] %s1302_s28 }
 0x13e   :  { %v1948_v29 = vpop.eup %1947  ;;  %v1567_v19 = vpack.c.bf16 %v936_v39, %v935_v4  ;;  %v870_v56 = vmul.f32 0.5, %v806_v24  ;;  %v811_v41 = vadd.f32 1.0, %v1946_v54  ;;  %1965 = vtanh.f32 %v688_v18  ;;  %s1978_s29 = scalar_lea.vmem %s1303_s28, 4096  ;;  %p1983_p1 = scmp.lt.s32.totalorder %s1303_s28, %s1303_s28 }
 0x13f   :  { %v1950_v2 = vpop.eup %1949  ;;  %v968_v37 = vmul.f32 %v904_v10, %v2512_v26  ;;  %v902_v34 = vmul.f32 0.5, %v838_v9  ;;  %v843_v59 = vadd.f32 1.0, %v1948_v29  ;;  %v720_v30 = vmul.f32 0.5, %v2595_v22  ;;  %p1979_p0 = scmp.ne.s32.totalorder %s1303_s28, %s1978_s29  ;;  %p1984_p2 = scmp.lt.s32.totalorder %s1978_s29, %s1978_s29 }
 0x140   :  { %v1952_v35 = vpop.eup %1951  ;;  %1679 = vst [vmem:[#allocation2 + $0x58] sm:$0xff] %v1567_v19   ;;  %v934_v32 = vmul.f32 %v870_v56, %v2517_v11  ;;  %v809_v13 = vadd.f32 1.0, %v1950_v2  ;;  %v965_v55 = vmul.f32 %v901_v20, %v2498_v25  ;;  %v875_v21 = vmul.f32 0.5, %v811_v41 }
 0x141   :  { %v1954_v61 = vpop.eup %1953  ;;  %v1647_v0 = vpack.c.bf16 %v968_v37, %v967_v52  ;;  %v966_v51 = vmul.f32 %v902_v34, %v2523_v58  ;;  %v841_v38 = vadd.f32 1.0, %v1952_v35  ;;  %1967 = vtanh.f32 %v685_v50  ;;  %p1985_p3 = por %p1984_p2, %p1983_p1 }
 0x142   :  { %v1956_v26 = vpop.eup %1955  ;;  %v1562_v1 = vpack.c.bf16 %v934_v32, %v933_v28  ;;  %v812_v14 = vadd.f32 1.0, %v1954_v61  ;;  %v907_v27 = vmul.f32 0.5, %v843_v59  ;;  %1969 = vtanh.f32 %v717_v23 }
 0x143   :  { %v1958_v36 = vpop.eup %1957  ;;  %1695 = vst [vmem:[#allocation2 + $0xd8] sm:$0xff] %v1647_v0   ;;  %v1642_v57 = vpack.c.bf16 %v966_v51, %v965_v55  ;;  %v844_v11 = vadd.f32 1.0, %v1956_v26  ;;  %v873_v5 = vmul.f32 0.5, %v809_v13  ;;  %1971 = vtanh.f32 %v720_v30  ;;  %p1986_p4 = pnand %p1985_p3, %p1979_p0 }
 0x144   :  { %v1960_v49 = vpop.eup %1959  ;;  %1678 = vst [vmem:[#allocation2 + $0x50] sm:$0xff] %v1562_v1   ;;  %v876_v4 = vmul.f32 0.5, %v812_v14  ;;  %v810_v25 = vadd.f32 1.0, %v1958_v36  ;;  %v905_v58 = vmul.f32 0.5, %v841_v38  ;;  %v518_v7 = vadd.f32 %v1977_v44, %v2474_v15 }
 0x145   :  { %v1962_v31 = vpop.eup %1961  ;;  %1694 = vst [vmem:[#allocation2 + $0xd0] sm:$0xff] %v1642_v57   ;;  %v908_v16 = vmul.f32 0.5, %v844_v11  ;;  %v842_v47 = vadd.f32 1.0, %v1960_v49  ;;  %v939_v52 = vmul.f32 %v875_v21, %v2527_v62  ;;  %v971_v24 = vmul.f32 %v907_v27, %v2532_v6 }
 0x146   :  { %v940_v20 = vmul.f32 %v876_v4, %v2548_v8  ;;  %v874_v63 = vmul.f32 0.5, %v810_v25  ;;  %v815_v43 = vadd.f32 1.0, %v1962_v31  ;;  %v1964_v39 = vpop.eup %1963  ;;  %v686_v10 = vmul.f32 0.5, %v518_v7 }
 0x147   :  { %v972_v50 = vmul.f32 %v908_v16, %v2552_v33  ;;  %v906_v54 = vmul.f32 0.5, %v842_v47  ;;  %v937_v9 = vmul.f32 %v873_v5, %v2536_v42  ;;  %v646_v15 = vadd.f32 %v1977_v44, %v2476_v17 }
 0x148   :  { %v1577_v18 = vpack.c.bf16 %v940_v20, %v939_v52  ;;  %v938_v29 = vmul.f32 %v874_v63, %v2556_v12  ;;  %v1966_v19 = vpop.eup %1965  ;;  %v969_v62 = vmul.f32 %v905_v58, %v2544_v48  ;;  %v879_v6 = vmul.f32 0.5, %v815_v43 }
 0x149   :  { %v1657_v8 = vpack.c.bf16 %v972_v50, %v971_v24  ;;  %v970_v56 = vmul.f32 %v906_v54, %v2561_v40  ;;  %v816_v23 = vadd.f32 1.0, %v1966_v19  ;;  %v847_v2 = vadd.f32 1.0, %v1964_v39 }
 0x14a   :  { %1681 = vst [vmem:[#allocation2 + $0x68] sm:$0xff] %v1577_v18   ;;  %v1572_v41 = vpack.c.bf16 %v938_v29, %v937_v9  ;;  %1973 = vtanh.f32 %v686_v10  ;;  %v718_v12 = vmul.f32 0.5, %v646_v15  ;;  %v943_v48 = vmul.f32 %v879_v6, %v2565_v46 }
 0x14b   :  { %1697 = vst [vmem:[#allocation2 + $0xe8] sm:$0xff] %v1657_v8   ;;  %v1652_v33 = vpack.c.bf16 %v970_v56, %v969_v62  ;;  %v1968_v42 = vpop.eup %1967  ;;  %v880_v37 = vmul.f32 0.5, %v816_v23  ;;  %v911_v40 = vmul.f32 0.5, %v847_v2 }
 0x14c   :  { %1680 = vst [vmem:[#allocation2 + $0x60] sm:$0xff] %v1572_v41   ;;  %v1970_v34 = vpop.eup %1969  ;;  %1975 = vtanh.f32 %v718_v12  ;;  %v813_v13 = vadd.f32 1.0, %v1968_v42 }
 0x14d   :  { %1696 = vst [vmem:[#allocation2 + $0xe0] sm:$0xff] %v1652_v33   ;;  %v1972_v17 = vpop.eup %1971  ;;  %v944_v59 = vmul.f32 %v880_v37, %v2588_v60  ;;  %v975_v30 = vmul.f32 %v911_v40, %v2573_v45  ;;  %v845_v0 = vadd.f32 1.0, %v1970_v34 }
 0x14e   :  { %v848_v35 = vadd.f32 1.0, %v1972_v17  ;;  %v877_v38 = vmul.f32 0.5, %v813_v13 }
 0x14f   :  { %v1587_v28 = vpack.c.bf16 %v944_v59, %v943_v48  ;;  %v909_v60 = vmul.f32 0.5, %v845_v0 }
 0x150   :  { %v912_v32 = vmul.f32 0.5, %v848_v35  ;;  %v941_v14 = vmul.f32 %v877_v38, %v2578_v53 }
 0x151   :  { %1683 = vst [vmem:[#allocation2 + $0x78] sm:$0xff] %v1587_v28   ;;  %v973_v45 = vmul.f32 %v909_v60, %v2584_v3 }
 0x152   :  { %v976_v61 = vmul.f32 %v912_v32, %v2595_v22 }
 0x154   :  { %v1974_v55 = vpop.eup %1973  ;;  %v1667_v51 = vpack.c.bf16 %v976_v61, %v975_v30 }
 0x155   :  { %v814_v26 = vadd.f32 1.0, %v1974_v55 }
 0x156   :  { %1699 = vst [vmem:[#allocation2 + $0xf8] sm:$0xff] %v1667_v51   ;;  %v1976_v46 = vpop.eup %1975 }
 0x157   :  { %v878_v1 = vmul.f32 0.5, %v814_v26  ;;  %v846_v21 = vadd.f32 1.0, %v1976_v46 }
 0x159   :  { %v942_v36 = vmul.f32 %v878_v1, %v518_v7  ;;  %v910_v57 = vmul.f32 0.5, %v846_v21 }
 0x15b   :  { %v1582_v27 = vpack.c.bf16 %v942_v36, %v941_v14  ;;  %v974_v22 = vmul.f32 %v910_v57, %v646_v15 }
 0x15d   :  { %1682 = vst [vmem:[#allocation2 + $0x70] sm:$0xff] %v1582_v27   ;;  %v1662_v11 = vpack.c.bf16 %v974_v22, %v973_v45 }
 0x15f   :  { %1698 = vst [vmem:[#allocation2 + $0xf0] sm:$0xff] %v1662_v11  }
 0x160   :  { %1989 = shalt.err (!%p1986_p4)
}
 0x161   :  { %s1990_s5 = scalar_lea.hbm %s2639_s3, 4096 }
 0x162   :  { %p1991_p5 = scmp.ne.s32.totalorder %s2639_s3, %s1990_s5  ;;  %p1994_p6 = scmp.lt.u32.totalorder %s1990_s5, %s2639_s3 }
 0x164   :  { %p1996_p7 = pnand %p1994_p6, %p1991_p5 }
 0x166   :  { %1999 = shalt.err (!%p1996_p7)
}
 0x167   :  { %s2003_s10 = smov 64   ;;  %s2004_s11 = smov 4  }
 0x168   :  { %1308 = dma.vmem_to_hbm [thread:$0]  %s1303_s28, 4096, %s2639_s3, [#allocation3], %s2003_s10, %s2003_s10, %s2004_s11  }
 0x169   :  { %2000 = dma.done.wait [#allocation3], 4096  }
 0x16a   :  { %2001 = vsyncadd [#allocation3], 4294963200 }
 0x16b   :  { %1312 = vsyncpa [#allocation3], 1 }

</bundles_post_ra>
